<compile_context>
chip_gen: v5e
topology: v5e:2x2
jax: 0.10.0
libtpu: 0.0.40
codegen_flags: <defaults>
</compile_context>

<pallas_src>
import functools
import math

import jax
import jax.numpy as jnp
from jax.experimental import pallas as pl
from jax.experimental.pallas import tpu as pltpu


_INV_SQRT2 = 0.7071067811865476  # 1/sqrt(2), hoisted constant


def mlp_kernel(x_ref, w1_ref, b1_ref, w2_ref, b2_ref, o_ref, acc_ref, *, approx_gelu):
    j = pl.program_id(1)  # mlp_dim (D) tile index == fc2 reduction axis

    @pl.when(j == 0)
    def _init():
        acc_ref[...] = jnp.zeros_like(acc_ref)

    # fc1 tile: (tm, Hp) bf16 @ (Hp, td) bf16 -> f32; bias + GELU in f32.
    h = jnp.dot(x_ref[...], w1_ref[...], preferred_element_type=jnp.float32)
    h = h + b1_ref[...]
    if approx_gelu:
        # tanh-approx GELU goes to the (otherwise idle) EUP slot.
        h = jax.nn.gelu(h, approximate=True)
    else:
        # exact erf-based GELU (matches torch.nn.GELU() default)
        h = 0.5 * h * (1.0 + jax.lax.erf(h * _INV_SQRT2))
    # dropout -> identity (eval)

    # fc2 partial sum for this D tile: (tm, td) @ (td, Hp), accumulated in f32.
    acc_ref[...] += jnp.dot(h.astype(w2_ref.dtype), w2_ref[...],
                            preferred_element_type=jnp.float32)

    @pl.when(j == pl.num_programs(1) - 1)
    def _finalize():
        # fc2 bias in f32, then cast to output dtype.  dropout -> identity.
        o_ref[...] = (acc_ref[...] + b2_ref[...]).astype(o_ref.dtype)


def _round_up(x, m):
    return ((x + m - 1) // m) * m


def _tpu_vmem_and_cores():
    """(physical VMEM bytes per TC, # TensorCores per chip, generation tag)."""
    kind = ""
    try:
        kind = jax.devices()[0].device_kind.lower()
    except Exception:  # pragma: no cover
        pass
    if "v7" in kind:
        default_vmem, cores, gen = 64 << 20, 2, "v7"
    elif "v6" in kind:
        default_vmem, cores, gen = 128 << 20, 1, "v6"
    elif "v5" in kind:
        default_vmem, cores, gen = 128 << 20, 1, "v5"
    else:
        default_vmem, cores, gen = 64 << 20, 1, "unknown"  # conservative

    vmem = default_vmem
    try:
        info = pltpu.get_tpu_info()
        cap = int(info.vmem_capacity_bytes)
        if cap > 0:
            vmem = cap
    except Exception:
        pass
    return vmem, cores, gen


def _step_vmem_bytes(tm, td, Hp, out_bytes):
    """Per-grid-step VMEM footprint (double-buffered tiles + scratch)."""
    x_tile = tm * Hp * 2           # bf16
    w1_tile = Hp * td * 2          # bf16
    b1_tile = max(td, 128) * 4     # f32
    w2_tile = td * Hp * 2          # bf16
    b2_tile = max(Hp, 128) * 4     # f32
    out_tile = tm * Hp * out_bytes
    acc = tm * Hp * 4              # f32 accumulator scratch
    h_scratch = tm * td * 4        # Mosaic internal scratch for the GELU intermediate
    return (2 * (x_tile + w1_tile + b1_tile + w2_tile + b2_tile + out_tile)
            + acc + h_scratch)


def _select_tiling(M, Hp, Dp, out_bytes):
    """Generation-aware (tm, td, vmem_limit_bytes)."""
    vmem_cap, num_tc, gen = _tpu_vmem_and_cores()
    budget = int(0.80 * vmem_cap)
    headroom = 2 << 20

    # Row tile: arithmetic intensity of the j-loop is ~tm FLOPs/byte of weight
    # stream, so push tm up where the HBM ridge demands it (v6e), keep it
    # moderate where it's already compute-bound (v5e) or VMEM-tight (v7x).
    if gen == "v6":
        tm = 1024 if M >= 4096 else 512
    else:  # v5 / v7 / unknown
        tm = 256
    tm = min(tm, _round_up(M, 16))

    # v7x: 2 TensorCores per chip -> make sure the "parallel" M axis has at
    # least 2 programs so both cores get work.
    if num_tc >= 2 and (_round_up(M, tm) // tm) < 2 and M > 16:
        tm = max(16, _round_up(-(-M // 2), 16))

    # td: largest multiple-of-128 divisor of Dp that fits the VMEM budget
    # (fewer j steps -> less accumulator RMW traffic and per-step overhead).
    td_candidates = sorted(
        (d for d in range(128, Dp + 1, 128) if Dp % d == 0), reverse=True)

    while True:
        for td in td_candidates:
            step = _step_vmem_bytes(tm, td, Hp, out_bytes)
            if step + headroom <= budget:
                vmem_limit = int(min(int(0.85 * vmem_cap),
                                     max(step + (4 << 20), 16 << 20)))
                return tm, td, vmem_limit
        if tm <= 16:
            break
        tm = max(16, _round_up(tm // 2, 16))

    # Fallback for pathological shapes: smallest tiles, request what we need.
    td = td_candidates[-1]
    step = _step_vmem_bytes(tm, td, Hp, out_bytes)
    return tm, td, int(min(int(0.90 * vmem_cap), step + (4 << 20)))


def prepare_mlp_weights(w1, b1, w2, b2):
    """Pad to lane-dense layout and pre-cast weights to bf16 ONCE.

    Doing this outside the per-call path avoids re-reading the full f32
    weights and writing a bf16 copy to HBM on every forward call.
    w1: (H, D), b1: (D,), w2: (D, H), b2: (H,).
    """
    H, D = w1.shape
    Hp = _round_up(H, 128)
    Dp = _round_up(D, 128)
    w1p = jnp.pad(w1, ((0, Hp - H), (0, Dp - D))).astype(jnp.bfloat16)
    w2p = jnp.pad(w2, ((0, Dp - D), (0, Hp - H))).astype(jnp.bfloat16)
    b1p = jnp.pad(b1.reshape(1, D).astype(jnp.float32), ((0, 0), (0, Dp - D)))
    b2p = jnp.pad(b2.reshape(1, H).astype(jnp.float32), ((0, 0), (0, Hp - H)))
    return w1p, b1p, w2p, b2p


@functools.partial(jax.jit,
                   static_argnames=("tm", "td", "vmem_limit", "approx_gelu"))
def _mlp_pallas_call(x, w1p, b1p, w2p, b2p, *, tm, td, vmem_limit, approx_gelu):
    M, H = x.shape
    Hp, Dp = w1p.shape
    out_dtype = x.dtype
    out_bytes = jnp.dtype(out_dtype).itemsize

    Mp = _round_up(M, tm)
    # Only the (small) activation pad/cast stays in the per-call path.
    xp = jnp.pad(x, ((0, Mp - M), (0, Hp - H))).astype(jnp.bfloat16)

    grid = (Mp // tm, Dp // td)

    # Account for weight re-streaming once per row tile.
    cost = pl.CostEstimate(
        flops=4 * Mp * Hp * Dp,                 # two matmuls: 2*M*H*D each
        transcendentals=Mp * Dp,                # erf/tanh in GELU
        bytes_accessed=(xp.size * 2
                        + grid[0] * (w1p.size * 2 + w2p.size * 2
                                     + b1p.size * 4 + b2p.size * 4)
                        + Mp * Hp * out_bytes),
    )

    kernel = functools.partial(mlp_kernel, approx_gelu=approx_gelu)

    out = pl.pallas_call(
        kernel,
        out_shape=jax.ShapeDtypeStruct((Mp, Hp), out_dtype),
        grid_spec=pltpu.PrefetchScalarGridSpec(
            num_scalar_prefetch=0,
            grid=grid,
            in_specs=[
                pl.BlockSpec((tm, Hp), lambda i, j: (i, 0)),   # x row tile
                pl.BlockSpec((Hp, td), lambda i, j: (0, j)),   # w1 N-tile
                pl.BlockSpec((1, td), lambda i, j: (0, j)),    # b1 tile
                pl.BlockSpec((td, Hp), lambda i, j: (j, 0)),   # w2 K-tile
                pl.BlockSpec((1, Hp), lambda i, j: (0, 0)),    # b2
            ],
            out_specs=pl.BlockSpec((tm, Hp), lambda i, j: (i, 0)),
            scratch_shapes=[pltpu.VMEM((tm, Hp), jnp.float32)],
        ),
        compiler_params=pltpu.CompilerParams(
            dimension_semantics=("parallel", "arbitrary"),
            vmem_limit_bytes=vmem_limit,
        ),
        cost_estimate=cost,
    )(xp, w1p, b1p, w2p, b2p)

    return out[:M, :H]


def mlp_pallas(x, w1p, b1p, w2p, b2p, *, approx_gelu=False):
    """x: (M, H) unpadded; weights from prepare_mlp_weights. Returns (M, H)."""
    M, H = x.shape
    Hp, Dp = w1p.shape
    out_bytes = jnp.dtype(x.dtype).itemsize
    tm, td, vmem_limit = _select_tiling(M, Hp, Dp, out_bytes)
    return _mlp_pallas_call(x, w1p, b1p, w2p, b2p,
                            tm=tm, td=td, vmem_limit=vmem_limit,
                            approx_gelu=approx_gelu)


def xavier_uniform(key, shape):
    # shape = (in_features, out_features); xavier bound uses fan_in + fan_out
    fan_in, fan_out = shape
    bound = math.sqrt(6.0 / (fan_in + fan_out))
    return jax.random.uniform(key, shape, jnp.float32, -bound, bound)


if __name__ == "__main__":
    # Small config consistent with the module: hidden_size=32, mlp_dim=64,
    # input x of shape (batch=2, seq=8, hidden=32).
    hidden_size = 32
    mlp_dim = 64
    B, S = 2, 8

    key = jax.random.PRNGKey(0)
    k_x, k_w1, k_b1, k_w2, k_b2 = jax.random.split(key, 5)

    x = jax.random.normal(k_x, (B, S, hidden_size), jnp.float32)

    # Deterministic parameter init mirroring _init_weights():
    # xavier_uniform_ on weights, normal(std=1e-6) on biases.
    w1 = xavier_uniform(k_w1, (hidden_size, mlp_dim))      # fc1 weight (in, out)
    b1 = 1e-6 * jax.random.normal(k_b1, (mlp_dim,), jnp.float32)
    w2 = xavier_uniform(k_w2, (mlp_dim, hidden_size))      # fc2 weight (in, out)
    b2 = 1e-6 * jax.random.normal(k_b2, (hidden_size,), jnp.float32)

    # One-time weight preparation (pad + bf16 cast) outside the hot path.
    w1p, b1p, w2p, b2p = prepare_mlp_weights(w1, b1, w2, b2)

    # Flatten tokens: (B*S, H), run kernel, reshape back.
    x2d = x.reshape(B * S, hidden_size)
    out2d = mlp_pallas(x2d, w1p, b1p, w2p, b2p)
    out = out2d.reshape(B, S, hidden_size)
    jax.block_until_ready(out)

    # Reference 1: same bf16-input / f32-accumulate math in pure JAX (tight tol).
    xb = x2d.astype(jnp.bfloat16)
    h = jnp.dot(xb, w1.astype(jnp.bfloat16),
                preferred_element_type=jnp.float32) + b1
    h = 0.5 * h * (1.0 + jax.lax.erf(h * _INV_SQRT2))
    ref_bf16 = (jnp.dot(h.astype(jnp.bfloat16), w2.astype(jnp.bfloat16),
                        preferred_element_type=jnp.float32) + b2)
    ref_bf16 = ref_bf16.reshape(B, S, hidden_size)
    assert jnp.allclose(out, ref_bf16, atol=1e-3, rtol=1e-3), "mismatch vs bf16 reference"

    # Reference 2: full-f32 torch-equivalent forward (loose tol for bf16 matmuls).
    h32 = x2d @ w1 + b1
    h32 = 0.5 * h32 * (1.0 + jax.lax.erf(h32 * _INV_SQRT2))
    ref_f32 = (h32 @ w2 + b2).reshape(B, S, hidden_size)
    assert jnp.allclose(out, ref_f32, atol=3e-2, rtol=3e-2), "mismatch vs f32 reference"

    print("KERNEL_OK")
</pallas_src>

<mosaic_0001>
module attributes {stable_mosaic.version = 11 : i64} {
  func.func @mlp_kernel(%arg0: i32, %arg1: i32, %arg2: memref<16x128xbf16, #tpu.memory_space<vmem>>, %arg3: memref<128x128xbf16, #tpu.memory_space<vmem>>, %arg4: memref<1x128xf32, #tpu.memory_space<vmem>>, %arg5: memref<128x128xbf16, #tpu.memory_space<vmem>>, %arg6: memref<1x128xf32, #tpu.memory_space<vmem>>, %arg7: memref<16x128xf32, #tpu.memory_space<vmem>>, %arg8: memref<16x128xf32, #tpu.memory_space<vmem>>) attributes {dimension_semantics = [#tpu.dimension_semantics<parallel>, #tpu.dimension_semantics<arbitrary>], iteration_bounds = array<i64: 1, 1>, scalar_prefetch = 0 : i64, scratch_operands = 1 : i64, tpu.core_type = #tpu.core_type<tc>, window_params = [{transform_indices = @transform_0, window_bounds = array<i64: 16, 128>}, {transform_indices = @transform_1, window_bounds = array<i64: 128, 128>}, {transform_indices = @transform_2, window_bounds = array<i64: 1, 128>}, {transform_indices = @transform_3, window_bounds = array<i64: 128, 128>}, {pipeline_mode = #tpu.pipeline_mode<synchronous>, transform_indices = @transform_4, window_bounds = array<i64: 1, 128>}, {transform_indices = @transform_5, window_bounds = array<i64: 16, 128>}]} {
    %c0_i32 = arith.constant 0 : i32
    %0 = arith.cmpi eq, %arg1, %c0_i32 : i32
    %1 = arith.extui %0 : i1 to i32
    %c0_i32_0 = arith.constant 0 : i32
    %2 = arith.cmpi ne, %1, %c0_i32_0 : i32
    scf.if %2 {
      %cst_18 = arith.constant 0.000000e+00 : f32
      %26 = vector.broadcast %cst_18 : f32 to vector<16x128xf32>
      %c0_19 = arith.constant 0 : index
      %c0_20 = arith.constant 0 : index
      %27 = vector.load %arg8[%c0_19, %c0_20] : memref<16x128xf32, #tpu.memory_space<vmem>>, vector<16x128xf32>
      tpu.vector_store %arg8[%c0_19, %c0_20], %26 {strides = array<i32>} : memref<16x128xf32, #tpu.memory_space<vmem>>, vector<16x128xf32>,
    } else {
    }
    %c0 = arith.constant 0 : index
    %c0_1 = arith.constant 0 : index
    %3 = vector.load %arg2[%c0, %c0_1] : memref<16x128xbf16, #tpu.memory_space<vmem>>, vector<16x128xbf16>
    %c0_2 = arith.constant 0 : index
    %c0_3 = arith.constant 0 : index
    %4 = vector.load %arg3[%c0_2, %c0_3] : memref<128x128xbf16, #tpu.memory_space<vmem>>, vector<128x128xbf16>
    %cst = arith.constant dense<0.000000e+00> : vector<16x128xf32>
    %5 = tpu.matmul %3, %4, %cst {dimension_numbers = #tpu.dot_dimension_numbers<[1], [0], [0], [1], [0, 0, 1, 1], [], []>} : vector<16x128xbf16>, vector<128x128xbf16>, vector<16x128xf32> -> vector<16x128xf32>
    %c0_4 = arith.constant 0 : index
    %c0_5 = arith.constant 0 : index
    %6 = vector.load %arg4[%c0_4, %c0_5] : memref<1x128xf32, #tpu.memory_space<vmem>>, vector<1x128xf32>
    %7 = vector.broadcast %6 : vector<1x128xf32> to vector<16x128xf32>
    %8 = arith.addf %5, %7 : vector<16x128xf32>
    %cst_6 = arith.constant 5.000000e-01 : f32
    %9 = vector.broadcast %cst_6 : f32 to vector<16x128xf32>
    %10 = arith.mulf %9, %8 : vector<16x128xf32>
    %cst_7 = arith.constant 0.707106769 : f32
    %11 = vector.broadcast %cst_7 : f32 to vector<16x128xf32>
    %12 = arith.mulf %8, %11 : vector<16x128xf32>
    %13 = math.erf %12 : vector<16x128xf32>
    %cst_8 = arith.constant 1.000000e+00 : f32
    %14 = vector.broadcast %cst_8 : f32 to vector<16x128xf32>
    %15 = arith.addf %14, %13 : vector<16x128xf32>
    %16 = arith.mulf %10, %15 : vector<16x128xf32>
    %c0_9 = arith.constant 0 : index
    %c0_10 = arith.constant 0 : index
    %17 = vector.load %arg8[%c0_9, %c0_10] : memref<16x128xf32, #tpu.memory_space<vmem>>, vector<16x128xf32>
    %18 = arith.truncf %16 : vector<16x128xf32> to vector<16x128xbf16>
    %c0_11 = arith.constant 0 : index
    %c0_12 = arith.constant 0 : index
    %19 = vector.load %arg5[%c0_11, %c0_12] : memref<128x128xbf16, #tpu.memory_space<vmem>>, vector<128x128xbf16>
    %cst_13 = arith.constant dense<0.000000e+00> : vector<16x128xf32>
    %20 = tpu.matmul %18, %19, %cst_13 {dimension_numbers = #tpu.dot_dimension_numbers<[1], [0], [0], [1], [0, 0, 1, 1], [], []>} : vector<16x128xbf16>, vector<128x128xbf16>, vector<16x128xf32> -> vector<16x128xf32>
    %21 = arith.addf %17, %20 : vector<16x128xf32>
    %c0_14 = arith.constant 0 : index
    %c0_15 = arith.constant 0 : index
    %22 = vector.load %arg8[%c0_14, %c0_15] : memref<16x128xf32, #tpu.memory_space<vmem>>, vector<16x128xf32>
    tpu.vector_store %arg8[%c0_14, %c0_15], %21 {strides = array<i32>} : memref<16x128xf32, #tpu.memory_space<vmem>>, vector<16x128xf32>,
    %c0_i32_16 = arith.constant 0 : i32
    %23 = arith.cmpi eq, %arg1, %c0_i32_16 : i32
    %24 = arith.extui %23 : i1 to i32
    %c0_i32_17 = arith.constant 0 : i32
    %25 = arith.cmpi ne, %24, %c0_i32_17 : i32
    scf.if %25 {
      %c0_18 = arith.constant 0 : index
      %c0_19 = arith.constant 0 : index
      %26 = vector.load %arg8[%c0_18, %c0_19] : memref<16x128xf32, #tpu.memory_space<vmem>>, vector<16x128xf32>
      %c0_20 = arith.constant 0 : index
      %c0_21 = arith.constant 0 : index
      %27 = vector.load %arg6[%c0_20, %c0_21] : memref<1x128xf32, #tpu.memory_space<vmem>>, vector<1x128xf32>
      %28 = vector.broadcast %27 : vector<1x128xf32> to vector<16x128xf32>
      %29 = arith.addf %26, %28 : vector<16x128xf32>
      %c0_22 = arith.constant 0 : index
      %c0_23 = arith.constant 0 : index
      %30 = vector.load %arg7[%c0_22, %c0_23] : memref<16x128xf32, #tpu.memory_space<vmem>>, vector<16x128xf32>
      tpu.vector_store %arg7[%c0_22, %c0_23], %29 {strides = array<i32>} : memref<16x128xf32, #tpu.memory_space<vmem>>, vector<16x128xf32>,
    } else {
    }
    return
  }
  func.func @transform_0(%arg0: i32, %arg1: i32) -> (i32, i32) {
    %c0_i32 = arith.constant 0 : i32
    %c0_i32_0 = arith.constant 0 : i32
    return %arg0, %c0_i32 : i32, i32
  }
  func.func @transform_1(%arg0: i32, %arg1: i32) -> (i32, i32) {
    %c0_i32 = arith.constant 0 : i32
    %c0_i32_0 = arith.constant 0 : i32
    return %c0_i32, %arg1 : i32, i32
  }
  func.func @transform_2(%arg0: i32, %arg1: i32) -> (i32, i32) {
    %c0_i32 = arith.constant 0 : i32
    %c0_i32_0 = arith.constant 0 : i32
    return %c0_i32, %arg1 : i32, i32
  }
  func.func @transform_3(%arg0: i32, %arg1: i32) -> (i32, i32) {
    %c0_i32 = arith.constant 0 : i32
    %c0_i32_0 = arith.constant 0 : i32
    return %arg1, %c0_i32 : i32, i32
  }
  func.func @transform_4(%arg0: i32, %arg1: i32) -> (i32, i32) {
    %c0_i32 = arith.constant 0 : i32
    %c0_i32_0 = arith.constant 0 : i32
    %c0_i32_1 = arith.constant 0 : i32
    return %c0_i32, %c0_i32_0 : i32, i32
  }
  func.func @transform_5(%arg0: i32, %arg1: i32) -> (i32, i32) {
    %c0_i32 = arith.constant 0 : i32
    %c0_i32_0 = arith.constant 0 : i32
    return %arg0, %c0_i32 : i32, i32
  }
}

</mosaic_0001>

<bundles_post_ra>
// kernel: _mlp_pallas_call.1
= control target key start
LH: loop header
LB: loop body
LE: loop exit
PB: predicated region body
PF: predicated region fallthrough
CT: control target
= control target key end

     0   :  { %10 = vsyncpa [#allocation4], 0  ;;  %s606_s0 = inlined_call_operand.vmem [shape: bf16[16,128], index: 0, kind: input, shape index: {}]   ;;  %s607_s1 = inlined_call_operand.hbm [shape: bf16[128,128], index: 1, kind: input, shape index: {}]   ;;  %s608_s2 = inlined_call_operand.vmem [shape: f32[1,128], index: 2, kind: input, shape index: {}]   ;;  %s609_s3 = inlined_call_operand.hbm [shape: bf16[128,128], index: 3, kind: input, shape index: {}]   ;;  %s610_s4 = inlined_call_operand.vmem [shape: f32[1,128], index: 4, kind: input, shape index: {}]   ;;  %s611_s5 = inlined_call_operand.hbm [shape: f32[16,128], index: 5, kind: output, shape index: {}]  }
   0x1   :  { %11 = vsyncpa [#allocation7], 0 }
   0x2   :  { %12 = vsyncpa [#allocation5], 0  ;;  %s19_s20 = sshll.u32 %s607_s1, 4  ;;  %s533_s21 = smov [#allocation3]   ;;  %s20_s20 = int_to_ptr.hbm [resolvable:$true] %s19_s20 }
   0x3   :  { %s21_s22 = sshll.u32 %s533_s21, 4  ;;  %s34_s25 = sshll.u32 %s609_s3, 4  ;;  %s22_s22 = int_to_ptr.vmem [resolvable:$true] %s21_s22  ;;  %s35_s25 = int_to_ptr.hbm [resolvable:$true] %s34_s25 }
   0x4   :  { %s534_s26 = smov 64   ;;  %s535_s27 = smov 4  }
   0x5   :  { %27 = dma.hbm_to_vmem [thread:$0]  %s20_s20, 1024, %s22_s22, [#allocation4], %s534_s26, %s534_s26, %s535_s27  }
   0x6   :  { %s536_s28 = smov [#allocation6]  }
   0x7   :  { %s36_s29 = sshll.u32 %s536_s28, 4  ;;  %s37_s29 = int_to_ptr.vmem [resolvable:$true] %s36_s29 }
   0x8   :  { %42 = dma.hbm_to_vmem [thread:$0]  %s35_s25, 1024, %s37_s29, [#allocation7], %s534_s26, %s534_s26, %s535_s27  }
   0x9   :  { %527 = dma.done.wait [#allocation4], 1024  }
   0xa   :  { %528 = vsyncadd [#allocation4], 4294966272 }
   0xb   :  { %529 = dma.done.wait [#allocation7], 1024  }
   0xc   :  { %530 = vsyncadd [#allocation7], 4294966272  ;;  %v433_v0 = vld [vmem:[#allocation3 + $0x38] sm:$0xff]  ;;  %v432_v1 = vld [vmem:[#allocation3 + $0x30] sm:$0xff]  ;;  %s537_s7 = smov [#allocation8]   ;;  %s341_s11 = sshll.u32 %s611_s5, 4  ;;  %s342_s11 = int_to_ptr.hbm [resolvable:$true] %s341_s11 }
   0xd   :  { %135 = vmatpush.bf16.msra.mxu0 %v433_v0  ;;  %v431_v2 = vld [vmem:[#allocation3 + $0x28] sm:$0xff]  ;;  %v430_v3 = vld [vmem:[#allocation3 + $0x20] sm:$0xff]  ;;  %v429_v4 = vld [vmem:[#allocation3 + $0x18] sm:$0xff]  ;;  %s339_s8 = sshll.u32 %s537_s7, 4  ;;  %s538_s12 = smov 128   ;;  %s340_s8 = int_to_ptr.vmem [resolvable:$true] %s339_s8 }
   0xe   :  { %v428_v5 = vld [vmem:[#allocation3 + $0x10] sm:$0xff]  ;;  %v427_v6 = vld [vmem:[#allocation3 + $0x8] sm:$0xff]  ;;  %v426_v7 = vld [vmem:[#allocation3] sm:$0xff]  ;;  %s539_s13 = smov 8  }
   0xf   :  { %v425_v8 = vld [vmem:[%s606_s0] sm:$0xff]  ;;  %v441_v10 = vld [vmem:[#allocation6 + $0x38] sm:$0xff]  ;;  %v440_v14 = vld [vmem:[#allocation6 + $0x30] sm:$0xff] }
  0x10   :  { %v449_v9 = vld [vmem:[%s608_s2] ss:$0 sm:$0xff]  ;;  %304 = vmatpush.bf16.msra.mxu1 %v441_v10  ;;  %v439_v16 = vld [vmem:[#allocation6 + $0x28] sm:$0xff]  ;;  %v437_v27 = vld [vmem:[#allocation6 + $0x18] sm:$0xff] }
  0x11   :  { %136 = vmatpush.bf16.msra.mxu0 %v432_v1  ;;  %v438_v21 = vld [vmem:[#allocation6 + $0x20] sm:$0xff]  ;;  %v436_v33 = vld [vmem:[#allocation6 + $0x10] sm:$0xff]  ;;  %v435_v41 = vld [vmem:[#allocation6 + $0x8] sm:$0xff] }
  0x12   :  { %v434_v48 = vld [vmem:[#allocation6] sm:$0xff] }
  0x14   :  { %305 = vmatpush.bf16.msra.mxu1 %v440_v14 }
  0x15   :  { %137 = vmatpush.bf16.msra.mxu0 %v431_v2 }
  0x18   :  { %306 = vmatpush.bf16.msra.mxu1 %v439_v16 }
  0x19   :  { %138 = vmatpush.bf16.msra.mxu0 %v430_v3 }
  0x1c   :  { %307 = vmatpush.bf16.msra.mxu1 %v438_v21 }
  0x1d   :  { %139 = vmatpush.bf16.msra.mxu0 %v429_v4 }
  0x20   :  { %308 = vmatpush.bf16.msra.mxu1 %v437_v27 }
  0x21   :  { %140 = vmatpush.bf16.msra.mxu0 %v428_v5 }
  0x24   :  { %309 = vmatpush.bf16.msra.mxu1 %v436_v33 }
  0x25   :  { %141 = vmatpush.bf16.msra.mxu0 %v427_v6 }
  0x28   :  { %310 = vmatpush.bf16.msra.mxu1 %v435_v41 }
  0x29   :  { %142 = vmatpush.bf16.msra.mxu0 %v426_v7 }
  0x2c   :  { %143 = vmatmul.bf16.vlgmr.msra.gmra.mxu0 %v425_v8  ;;  %311 = vmatpush.bf16.msra.mxu1 %v434_v48 }
  0xa9   :  { %v144_v11 = vpop.f32.mrf.mxu0 }
  0xaa   :  { %v582_v12 = vadd.f32 %v449_v9, %v144_v11 }
  0xac   :  { %v585_v13 = vmul.f32 0.70710677, %v582_v12 }
  0xae   :  { %v153_v15 = vmul.f32 %v585_v13, %v585_v13 }
  0xb0   :  { %v154_v17 = vmin.f32 %v153_v15, 16.0 }
  0xb1   :  { %v146_v18 = vpop.f32.mrf.mxu0 }
  0xb2   :  { %v155_v19 = vmul.f32 2.1237322e-06, %v154_v17  ;;  %v589_v20 = vadd.f32 %v449_v9, %v146_v18  ;;  %v166_v22 = vmul.f32 3.8918573e-05, %v154_v17 }
  0xb4   :  { %v156_v23 = vadd.f32 0.00028619796, %v155_v19  ;;  %v592_v24 = vmul.f32 0.70710677, %v589_v20  ;;  %v167_v25 = vadd.f32 0.001143296, %v166_v22 }
  0xb6   :  { %v193_v26 = vmul.f32 %v592_v24, %v592_v24  ;;  %v157_v28 = vmul.f32 %v156_v23, %v154_v17  ;;  %v168_v29 = vmul.f32 %v167_v25, %v154_v17 }
  0xb8   :  { %v194_v30 = vmin.f32 %v193_v26, 16.0  ;;  %v169_v31 = vadd.f32 0.014752088, %v168_v29  ;;  %v158_v35 = vadd.f32 0.0036580483, %v157_v28 }
  0xba   :  { %v195_v32 = vmul.f32 2.1237322e-06, %v194_v30  ;;  %v206_v34 = vmul.f32 3.8918573e-05, %v194_v30  ;;  %v170_v36 = vmul.f32 %v169_v31, %v154_v17  ;;  %v159_v43 = vmul.f32 %v158_v35, %v154_v17 }
  0xbb   :  { %v150_v35 = vmul.f32 0.5, %v589_v20 }
  0xbc   :  { %v196_v37 = vadd.f32 0.00028619796, %v195_v32  ;;  %v207_v38 = vadd.f32 0.001143296, %v206_v34  ;;  %v171_v39 = vadd.f32 0.112945676, %v170_v36 }
  0xbd   :  { %v160_v50 = vadd.f32 0.05243302, %v159_v43  ;;  %v149_v34 = vmul.f32 0.5, %v582_v12 }
  0xbe   :  { %v197_v40 = vmul.f32 %v196_v37, %v194_v30  ;;  %v208_v42 = vmul.f32 %v207_v38, %v194_v30  ;;  %v172_v44 = vmul.f32 %v171_v39, %v154_v17 }
  0xbf   :  { %v161_v56 = vmul.f32 %v160_v50, %v154_v17 }
  0xc0   :  { %v198_v45 = vadd.f32 0.0036580483, %v197_v40  ;;  %v209_v46 = vadd.f32 0.014752088, %v208_v42  ;;  %v173_v47 = vadd.f32 0.4994258, %v172_v44 }
  0xc1   :  { %v162_v60 = vadd.f32 0.18741608, %v161_v56 }
  0xc2   :  { %v210_v49 = vmul.f32 %v209_v46, %v194_v30  ;;  %v174_v51 = vmul.f32 %v173_v47, %v154_v17  ;;  %v199_v52 = vmul.f32 %v198_v45, %v194_v30 }
  0xc3   :  { %v163_v1 = vmul.f32 %v162_v60, %v154_v17 }
  0xc4   :  { %v211_v53 = vadd.f32 0.112945676, %v210_v49  ;;  %v175_v54 = vadd.f32 1.0, %v174_v51  ;;  %v200_v57 = vadd.f32 0.05243302, %v199_v52 }
  0xc5   :  { %v164_v7 = vadd.f32 1.1283791, %v163_v1 }
  0xc6   :  { %v212_v55 = vmul.f32 %v211_v53, %v194_v30  ;;  %451 = vrcp.f32 %v175_v54  ;;  %v201_v61 = vmul.f32 %v200_v57, %v194_v30  ;;  %v187_v4 = vand.u32 2147483648, %v175_v54 }
  0xc7   :  { %v185_v6 = vand.u32 2147483647, %v175_v54  ;;  %vm181_vm1 = vweird.f32 %v175_v54  ;;  %v165_v16 = vmul.f32 %v164_v7, %v585_v13 }
  0xc8   :  { %v213_v58 = vadd.f32 0.4994258, %v212_v55  ;;  %v202_v2 = vadd.f32 0.18741608, %v201_v61  ;;  %v188_v11 = vor.u32 1.1754944e-38, %v187_v4 }
  0xc9   :  { %vm186_vm3 = vcmp.eq.f32.partialorder %v185_v6, 8.507059e+37 }
  0xca   :  { %v214_v59 = vmul.f32 %v213_v58, %v194_v30  ;;  %v203_v9 = vmul.f32 %v202_v2, %v194_v30 }
  0xcc   :  { %v215_v62 = vadd.f32 1.0, %v214_v59  ;;  %v452_v63 = vpop.eup %451  ;;  %v204_v19 = vadd.f32 1.1283791, %v203_v9 }
  0xcd   :  { %v177_v0 = vmul.f32 %v452_v63, %v175_v54  ;;  %vm182_vm0 = vweird.f32 %v452_v63 }
  0xce   :  { %453 = vrcp.f32 %v215_v62  ;;  %vm183_vm2 = vmor %vm181_vm1, %vm182_vm0  ;;  %v227_v21 = vand.u32 2147483648, %v215_v62  ;;  %v225_v25 = vand.u32 2147483647, %v215_v62  ;;  %vm221_vm5 = vweird.f32 %v215_v62 }
  0xcf   :  { %v178_v3 = vsub.f32 1.0, %v177_v0  ;;  %v205_v28 = vmul.f32 %v204_v19, %v592_v24  ;;  %v450_v24 = vld [vmem:[%s610_s4] ss:$0 sm:$0xff] }
  0xd0   :  { %v228_v27 = vor.u32 1.1754944e-38, %v227_v21  ;;  %vm226_vm7 = vcmp.eq.f32.partialorder %v225_v25, 8.507059e+37 }
  0xd1   :  { %v179_v5 = vmul.f32 %v452_v63, %v178_v3 }
  0xd3   :  { %v180_v10 = vadd.f32 %v452_v63, %v179_v5 }
  0xd4   :  { %v454_v8 = vpop.eup %453 }
  0xd5   :  { %v217_v14 = vmul.f32 %v454_v8, %v215_v62  ;;  %v184_v15 = vsel %vm183_vm2, %v452_v63, %v180_v10  ;;  %vm222_vm4 = vweird.f32 %v454_v8 }
  0xd6   :  { %v189_v18 = vsel %vm186_vm3, %v188_v11, %v184_v15  ;;  %vm223_vm6 = vmor %vm221_vm5, %vm222_vm4 }
  0xd7   :  { %v218_v17 = vsub.f32 1.0, %v217_v14  ;;  %v190_v22 = vmul.f32 %v189_v18, %v165_v16 }
  0xd9   :  { %v219_v23 = vmul.f32 %v454_v8, %v218_v17  ;;  %v391_v29 = vclamps-f32 %v190_v22, 1.0 }
  0xdb   :  { %v220_v26 = vadd.f32 %v454_v8, %v219_v23  ;;  %v233_v33 = vadd.f32 1.0, %v391_v29 }
  0xdd   :  { %v224_v30 = vsel %vm223_vm6, %v454_v8, %v220_v26  ;;  %v235_v37 = vmul.f32 %v233_v33, %v149_v34 }
  0xde   :  { %v229_v31 = vsel %vm226_vm7, %v228_v27, %v224_v30 }
  0xdf   :  { %v230_v32 = vmul.f32 %v229_v31, %v205_v28 }
  0xe1   :  { %v392_v13 = vclamps-f32 %v230_v32, 1.0 }
  0xe3   :  { %v234_v36 = vadd.f32 1.0, %v392_v13 }
  0xe5   :  { %v236_v38 = vmul.f32 %v234_v36, %v150_v35 }
  0xe7   :  { %v239_v39 = vpack.c.bf16 %v236_v38, %v235_v37 }
  0xe9   :  { %312 = vmatmul.bf16.vlgmr.msra.gmra.mxu1 %v239_v39 }
 0x166   :  { %v313_v40 = vpop.f32.mrf.mxu1 }
 0x167   :  { %v331_v41 = vadd.f32 %v450_v24, %v313_v40 }
 0x169   :  { %333 = vst [vmem:[#allocation8] sm:$0xff] %v331_v41 }
 0x16e   :  { %v315_v12 = vpop.f32.mrf.mxu1 }
 0x16f   :  { %v332_v20 = vadd.f32 %v450_v24, %v315_v12 }
 0x171   :  { %334 = vst [vmem:[#allocation8 + $0x8] sm:$0xff] %v332_v20 }
 0x172   :  { %347 = dma.vmem_to_hbm [thread:$0]  %s340_s8, 256, %s342_s11, [#allocation5], %s538_s12, %s538_s12, %s539_s13  }
 0x173   :  { %531 = dma.done.wait [#allocation5], 256  }
 0x174   :  { %532 = vsyncadd [#allocation5], 4294967040 }
 0x175   :  { %352 = vsyncpa [#allocation4], 1 }
 0x176   :  { %353 = vsyncpa [#allocation7], 1 }
 0x177   :  { %354 = vsyncpa [#allocation5], 1 }

</bundles_post_ra>
